<compile_context>
chip_gen: v7x
topology: tpu7x:2x2x1
jax: 0.10.0
libtpu: 0.0.40
codegen_flags: <defaults>
</compile_context>

<pallas_src>
import functools

import jax
import jax.numpy as jnp
from jax.experimental import pallas as pl
from jax.experimental.pallas import tpu as pltpu

PAD_TOKEN_ID = 0
NORM_EPS = 1e-12  # torch.nn.functional.normalize default eps


def _round_up(x, m):
    return ((x + m - 1) // m) * m


def _sublane_pack(itemsize):
    return {4: 8, 2: 16, 1: 32}.get(int(itemsize), 8)


def _vmem_capacity_bytes():
    """Physical VMEM of the attached TPU; conservative (v7x) fallback."""
    try:
        cap = getattr(pltpu.get_tpu_info(), "vmem_capacity_bytes", None)
        if cap:
            return int(cap)
    except Exception:
        pass
    return 64 * 2**20


def _fc_kernel(h_ref, w_ref, b_ref, o_ref, *, mm_dtype, normalize):
    """Row-tile: linear projection (+ optional L2 normalization).

    h_ref: (TM, H)   input dtype     flattened hidden rows (unpadded H)
    w_ref: (H,  Ep)  mm_dtype        fc weight (transposed vs torch (E, H))
    b_ref: (1,  Ep)  float32         fc bias
    o_ref: (TM, Ep)  out dtype       (normalized) caption-embedding rows
    """
    a = h_ref[...]
    if a.dtype != mm_dtype:
        a = a.astype(mm_dtype)  # in-kernel VPU cast: one HBM read, bf16 MXU rate
    y = jnp.dot(a, w_ref[...], preferred_element_type=jnp.float32)
    y = y + b_ref[...]  # (TM, Ep) f32
    if normalize:
        # F.normalize(p=2, dim=-1): x / max(||x||_2, eps)
        #   == x * rsqrt(max(sum(x^2), eps^2))   (eps^2 = 1e-24 is a normal f32)
        sq = jnp.sum(y * y, axis=-1, keepdims=True)            # (TM, 1)
        inv = jax.lax.rsqrt(jnp.maximum(sq, NORM_EPS * NORM_EPS))  # 1 EUP op/row
        y = y * inv
    o_ref[...] = y.astype(o_ref.dtype)


def _select_tm(M, H, Ep, in_isz, w_isz, out_isz, capacity):
    """Largest row tile that fits VMEM, grid >= 2, sublane-pack aligned."""
    pack = max(_sublane_pack(in_isz), _sublane_pack(out_isz))
    budget = capacity - 8 * 2**20                       # compiler headroom
    fixed = 2 * H * Ep * w_isz + 4 * Ep * 4 + 2 * 2**20  # weight + bias + slack
    per_row = 2 * H * in_isz + 2 * Ep * out_isz + Ep * 4  # dbl-buf in/out + f32 y
    tm_fit = max(pack, (budget - fixed) // per_row)
    tm_max = 1024 if capacity >= 96 * 2**20 else 512     # 128 MiB parts vs v7x
    tm = min(tm_max, int(tm_fit))
    if M > pack:
        # keep at least two grid steps so the parallel axis shards across 2 TCs
        tm = min(tm, _round_up(pl.cdiv(M, 2), pack))
    tm = max(pack, (tm // pack) * pack)
    return tm


def text_extractor_forward(hidden, input_ids, fc_w, fc_b, *,
                           no_txtnorm=False, matmul_dtype=None, out_dtype=None):
    """JAX wrapper mirroring TextExtractor.forward.

    hidden:    (B, S, H) f32 or bf16 -- stand-in for BERT last_hidden_state
    input_ids: (B, S)    int32
    fc_w:      (H, E)                -- torch weight is (E, H); pass its transpose
    fc_b:      (E,)
    matmul_dtype: MXU operand dtype; default = hidden dtype if bf16 else f32.
    out_dtype:    output dtype; default f32 (bf16 halves the output write).
    returns (cap_emb (B, S, E), cap_len (B,) int32)
    """
    B, S, H = hidden.shape
    H_w, E = fc_w.shape
    assert H_w == H
    M = B * S

    if matmul_dtype is None:
        matmul_dtype = jnp.bfloat16 if hidden.dtype == jnp.bfloat16 else jnp.float32
    mm_dtype = jnp.dtype(matmul_dtype)
    o_dtype = jnp.dtype(jnp.float32) if out_dtype is None else jnp.dtype(out_dtype)

    in_isz = jnp.dtype(hidden.dtype).itemsize
    w_isz = mm_dtype.itemsize
    out_isz = o_dtype.itemsize

    # Only the E axis is padded (weight/bias/output) for lane-dense stores, and
    # only when needed; the big (M, H) activation is never padded or re-cast.
    Ep = _round_up(E, 128)
    pad_e = Ep - E

    h2 = hidden.reshape(M, H)
    w = fc_w if fc_w.dtype == mm_dtype else fc_w.astype(mm_dtype)
    if pad_e:
        w = jnp.pad(w, ((0, 0), (0, pad_e)))
    b = fc_b.astype(jnp.float32)
    if pad_e:
        b = jnp.pad(b, (0, pad_e))
    b2 = b.reshape(1, Ep)

    capacity = _vmem_capacity_bytes()
    TM = _select_tm(M, H, Ep, in_isz, w_isz, out_isz, capacity)
    grid_m = pl.cdiv(M, TM)  # ragged last block handled by Pallas masking

    footprint = (2 * TM * H * in_isz        # hidden tile (double-buffered)
                 + 2 * TM * Ep * out_isz    # output tile (double-buffered)
                 + 2 * H * Ep * w_isz       # weight (<= 2 copies)
                 + 2 * Ep * 4               # bias
                 + TM * Ep * 4)             # f32 intermediate
    vmem_limit = int(min(capacity, max(footprint + 8 * 2**20, 16 * 2**20)))

    cost = pl.CostEstimate(
        flops=2 * M * H * E,
        transcendentals=0 if no_txtnorm else M,
        bytes_accessed=in_isz * M * H + w_isz * H * E + 4 * E + out_isz * M * E,
    )

    kernel = functools.partial(_fc_kernel, mm_dtype=mm_dtype,
                               normalize=not no_txtnorm)

    def _call(single_buffer_invariants):
        inv_kwargs = ({"pipeline_mode": pl.Buffered(1)}
                      if single_buffer_invariants else {})
        grid_spec = pltpu.PrefetchScalarGridSpec(
            num_scalar_prefetch=0,
            grid=(grid_m,),
            in_specs=[
                pl.BlockSpec((TM, H), lambda m: (m, 0)),
                # Weight / bias are grid-invariant (constant block index):
                # fetched once, kept resident; single-buffered to save VMEM.
                pl.BlockSpec((H, Ep), lambda m: (0, 0), **inv_kwargs),
                pl.BlockSpec((1, Ep), lambda m: (0, 0), **inv_kwargs),
            ],
            out_specs=pl.BlockSpec((TM, Ep), lambda m: (m, 0)),
        )
        return pl.pallas_call(
            kernel,
            out_shape=jax.ShapeDtypeStruct((M, Ep), o_dtype),
            grid_spec=grid_spec,
            compiler_params=pltpu.CompilerParams(
                dimension_semantics=("parallel",),
                vmem_limit_bytes=vmem_limit,
            ),
            cost_estimate=cost,
        )(h2, w, b2)

    try:
        out = _call(True)
    except Exception:
        # pipeline_mode=pl.Buffered(1) unsupported on this jax/Mosaic build.
        out = _call(False)

    cap_emb = (out[:, :E] if pad_e else out).reshape(B, S, E)
    # cap_len = input_ids.ne(pad_token_id).sum(dim=1)  (trivial glue)
    cap_len = jnp.sum((input_ids != PAD_TOKEN_ID).astype(jnp.int32), axis=1)
    return cap_emb, cap_len


def _reference(hidden, input_ids, fc_w, fc_b):
    y = jnp.einsum("bsh,he->bse", hidden, fc_w) + fc_b
    n = jnp.maximum(jnp.linalg.norm(y, axis=-1, keepdims=True), NORM_EPS)
    return y / n, jnp.sum((input_ids != PAD_TOKEN_ID).astype(jnp.int32), axis=1)


if __name__ == "__main__":
    # Small shapes: batch=2, seq=8, hidden=32, embed_size=32
    B, S, H, E = 2, 8, 32, 32
    key = jax.random.PRNGKey(0)
    k_h, k_w, k_b, k_ids = jax.random.split(key, 4)

    hidden = jax.random.normal(k_h, (B, S, H), dtype=jnp.float32)
    fc_w = jax.random.normal(k_w, (H, E), dtype=jnp.float32) * (1.0 / jnp.sqrt(H))
    fc_b = jax.random.normal(k_b, (E,), dtype=jnp.float32) * 0.01
    # Synthetic token ids with trailing padding (pad_token_id = 0)
    ids = jax.random.randint(k_ids, (B, S), 1, 1000, dtype=jnp.int32)
    pos = jnp.arange(S)[None, :]
    lengths = jnp.array([[6], [8]], dtype=jnp.int32)
    input_ids = jnp.where(pos < lengths, ids, 0)

    # Default (f32 MXU) path: bit-tight vs the reference.
    cap_emb, cap_len = text_extractor_forward(hidden, input_ids, fc_w, fc_b)
    jax.block_until_ready((cap_emb, cap_len))

    ref_emb, ref_len = _reference(hidden, input_ids, fc_w, fc_b)
    assert cap_emb.shape == (B, S, E)
    assert cap_len.shape == (B,)
    assert jnp.allclose(cap_emb, ref_emb, atol=1e-5, rtol=1e-5)
    assert jnp.array_equal(cap_len, ref_len)

    # no_txtnorm path.
    emb_raw, _ = text_extractor_forward(hidden, input_ids, fc_w, fc_b,
                                        no_txtnorm=True)
    jax.block_until_ready(emb_raw)
    ref_raw = jnp.einsum("bsh,he->bse", hidden, fc_w) + fc_b
    assert jnp.allclose(emb_raw, ref_raw, atol=1e-5, rtol=1e-5)

    # bf16-MXU perf path (in-kernel cast of f32 activations); loose tolerance.
    emb_bf, _ = text_extractor_forward(hidden, input_ids, fc_w, fc_b,
                                       matmul_dtype=jnp.bfloat16)
    jax.block_until_ready(emb_bf)
    assert jnp.allclose(emb_bf, ref_emb, atol=3e-2, rtol=3e-2)

    print("KERNEL_OK")
</pallas_src>

<mosaic_0001>
module attributes {stable_mosaic.version = 11 : i64} {
  func.func @_fc_kernel(%arg0: i32, %arg1: memref<8x32xf32, #tpu.memory_space<vmem>>, %arg2: memref<32x128xf32, #tpu.memory_space<vmem>>, %arg3: memref<1x128xf32, #tpu.memory_space<vmem>>, %arg4: memref<8x128xf32, #tpu.memory_space<vmem>>) attributes {dimension_semantics = [#tpu.dimension_semantics<parallel>], iteration_bounds = array<i64: 2>, scalar_prefetch = 0 : i64, scratch_operands = 0 : i64, tpu.core_type = #tpu.core_type<tc>, window_params = [{transform_indices = @transform_0, window_bounds = array<i64: 8, 32>}, {pipeline_mode = #tpu.pipeline_mode<synchronous>, transform_indices = @transform_1, window_bounds = array<i64: 32, 128>}, {pipeline_mode = #tpu.pipeline_mode<synchronous>, transform_indices = @transform_2, window_bounds = array<i64: 1, 128>}, {transform_indices = @transform_3, window_bounds = array<i64: 8, 128>}]} {
    %c0 = arith.constant 0 : index
    %c0_0 = arith.constant 0 : index
    %0 = vector.load %arg1[%c0, %c0_0] : memref<8x32xf32, #tpu.memory_space<vmem>>, vector<8x32xf32>
    %c0_1 = arith.constant 0 : index
    %c0_2 = arith.constant 0 : index
    %1 = vector.load %arg2[%c0_1, %c0_2] : memref<32x128xf32, #tpu.memory_space<vmem>>, vector<32x128xf32>
    %cst = arith.constant dense<0.000000e+00> : vector<8x128xf32>
    %2 = tpu.matmul %0, %1, %cst {dimension_numbers = #tpu.dot_dimension_numbers<[1], [0], [0], [1], [0, 0, 1, 1], [], []>} : vector<8x32xf32>, vector<32x128xf32>, vector<8x128xf32> -> vector<8x128xf32>
    %c0_3 = arith.constant 0 : index
    %c0_4 = arith.constant 0 : index
    %3 = vector.load %arg3[%c0_3, %c0_4] : memref<1x128xf32, #tpu.memory_space<vmem>>, vector<1x128xf32>
    %4 = vector.broadcast %3 : vector<1x128xf32> to vector<8x128xf32>
    %5 = arith.addf %2, %4 : vector<8x128xf32>
    %6 = arith.mulf %5, %5 : vector<8x128xf32>
    %cst_5 = arith.constant dense<0.000000e+00> : vector<8xf32>
    %7 = vector.multi_reduction <add>, %6, %cst_5 [1] : vector<8x128xf32> to vector<8xf32>
    %8 = vector.shape_cast %7 : vector<8xf32> to vector<8x1xf32>
    %cst_6 = arith.constant 1.000000e-24 : f32
    %9 = vector.broadcast %cst_6 : f32 to vector<8x1xf32>
    %10 = arith.maximumf %8, %9 : vector<8x1xf32>
    %11 = math.rsqrt %10 : vector<8x1xf32>
    %12 = vector.broadcast %11 : vector<8x1xf32> to vector<8x128xf32>
    %13 = arith.mulf %5, %12 : vector<8x128xf32>
    %c0_7 = arith.constant 0 : index
    %c0_8 = arith.constant 0 : index
    %14 = vector.load %arg4[%c0_7, %c0_8] : memref<8x128xf32, #tpu.memory_space<vmem>>, vector<8x128xf32>
    tpu.vector_store %arg4[%c0_7, %c0_8], %13 {strides = array<i32>} : memref<8x128xf32, #tpu.memory_space<vmem>>, vector<8x128xf32>,
    return
  }
  func.func @transform_0(%arg0: i32) -> (i32, i32) {
    %c0_i32 = arith.constant 0 : i32
    %c0_i32_0 = arith.constant 0 : i32
    return %arg0, %c0_i32 : i32, i32
  }
  func.func @transform_1(%arg0: i32) -> (i32, i32) {
    %c0_i32 = arith.constant 0 : i32
    %c0_i32_0 = arith.constant 0 : i32
    %c0_i32_1 = arith.constant 0 : i32
    return %c0_i32, %c0_i32_0 : i32, i32
  }
  func.func @transform_2(%arg0: i32) -> (i32, i32) {
    %c0_i32 = arith.constant 0 : i32
    %c0_i32_0 = arith.constant 0 : i32
    %c0_i32_1 = arith.constant 0 : i32
    return %c0_i32, %c0_i32_0 : i32, i32
  }
  func.func @transform_3(%arg0: i32) -> (i32, i32) {
    %c0_i32 = arith.constant 0 : i32
    %c0_i32_0 = arith.constant 0 : i32
    return %arg0, %c0_i32 : i32, i32
  }
}

module attributes {stable_mosaic.version = 11 : i64} {
  func.func @_fc_kernel(%arg0: i32, %arg1: memref<8x32xf32, #tpu.memory_space<vmem>>, %arg2: memref<32x128xf32, #tpu.memory_space<vmem>>, %arg3: memref<1x128xf32, #tpu.memory_space<vmem>>, %arg4: memref<8x128xf32, #tpu.memory_space<vmem>>) attributes {dimension_semantics = [#tpu.dimension_semantics<parallel>], iteration_bounds = array<i64: 2>, scalar_prefetch = 0 : i64, scratch_operands = 0 : i64, tpu.core_type = #tpu.core_type<tc>, window_params = [{transform_indices = @transform_0, window_bounds = array<i64: 8, 32>}, {pipeline_mode = #tpu.pipeline_mode<synchronous>, transform_indices = @transform_1, window_bounds = array<i64: 32, 128>}, {pipeline_mode = #tpu.pipeline_mode<synchronous>, transform_indices = @transform_2, window_bounds = array<i64: 1, 128>}, {transform_indices = @transform_3, window_bounds = array<i64: 8, 128>}]} {
    %c0 = arith.constant 0 : index
    %c0_0 = arith.constant 0 : index
    %0 = vector.load %arg1[%c0, %c0_0] : memref<8x32xf32, #tpu.memory_space<vmem>>, vector<8x32xf32>
    %c0_1 = arith.constant 0 : index
    %c0_2 = arith.constant 0 : index
    %1 = vector.load %arg2[%c0_1, %c0_2] : memref<32x128xf32, #tpu.memory_space<vmem>>, vector<32x128xf32>
    %cst = arith.constant dense<0.000000e+00> : vector<8x128xf32>
    %2 = tpu.matmul %0, %1, %cst {dimension_numbers = #tpu.dot_dimension_numbers<[1], [0], [0], [1], [0, 0, 1, 1], [], []>} : vector<8x32xf32>, vector<32x128xf32>, vector<8x128xf32> -> vector<8x128xf32>
    %c0_3 = arith.constant 0 : index
    %c0_4 = arith.constant 0 : index
    %3 = vector.load %arg3[%c0_3, %c0_4] : memref<1x128xf32, #tpu.memory_space<vmem>>, vector<1x128xf32>
    %4 = vector.broadcast %3 : vector<1x128xf32> to vector<8x128xf32>
    %5 = arith.addf %2, %4 : vector<8x128xf32>
    %6 = arith.mulf %5, %5 : vector<8x128xf32>
    %cst_5 = arith.constant dense<0.000000e+00> : vector<8xf32>
    %7 = vector.multi_reduction <add>, %6, %cst_5 [1] : vector<8x128xf32> to vector<8xf32>
    %8 = vector.shape_cast %7 : vector<8xf32> to vector<8x1xf32>
    %cst_6 = arith.constant 1.000000e-24 : f32
    %9 = vector.broadcast %cst_6 : f32 to vector<8x1xf32>
    %10 = arith.maximumf %8, %9 : vector<8x1xf32>
    %11 = math.rsqrt %10 : vector<8x1xf32>
    %12 = vector.broadcast %11 : vector<8x1xf32> to vector<8x128xf32>
    %13 = arith.mulf %5, %12 : vector<8x128xf32>
    %c0_7 = arith.constant 0 : index
    %c0_8 = arith.constant 0 : index
    %14 = vector.load %arg4[%c0_7, %c0_8] : memref<8x128xf32, #tpu.memory_space<vmem>>, vector<8x128xf32>
    tpu.vector_store %arg4[%c0_7, %c0_8], %13 {strides = array<i32>} : memref<8x128xf32, #tpu.memory_space<vmem>>, vector<8x128xf32>,
    return
  }
  func.func @transform_0(%arg0: i32) -> (i32, i32) {
    %c0_i32 = arith.constant 0 : i32
    %c0_i32_0 = arith.constant 0 : i32
    return %arg0, %c0_i32 : i32, i32
  }
  func.func @transform_1(%arg0: i32) -> (i32, i32) {
    %c0_i32 = arith.constant 0 : i32
    %c0_i32_0 = arith.constant 0 : i32
    %c0_i32_1 = arith.constant 0 : i32
    return %c0_i32, %c0_i32_0 : i32, i32
  }
  func.func @transform_2(%arg0: i32) -> (i32, i32) {
    %c0_i32 = arith.constant 0 : i32
    %c0_i32_0 = arith.constant 0 : i32
    %c0_i32_1 = arith.constant 0 : i32
    return %c0_i32, %c0_i32_0 : i32, i32
  }
  func.func @transform_3(%arg0: i32) -> (i32, i32) {
    %c0_i32 = arith.constant 0 : i32
    %c0_i32_0 = arith.constant 0 : i32
    return %arg0, %c0_i32 : i32, i32
  }
}

</mosaic_0001>

<bundles_post_ra>
// kernel: tpu_custom_call.1
= control target key start
LH: loop header
LB: loop body
LE: loop exit
PB: predicated region body
PF: predicated region fallthrough
CT: control target
= control target key end

     0   :  { %8 = vsyncpa [#allocation3], 0  ;;  %s851_s0 = inlined_call_operand.hbm [shape: f32[16,32], index: 0, kind: input, shape index: {}]   ;;  %s852_s1 = inlined_call_operand.hbm [shape: f32[32,128], index: 1, kind: input, shape index: {}]   ;;  %s853_s2 = inlined_call_operand.vmem [shape: f32[1,128], index: 2, kind: input, shape index: {}]   ;;  %s854_s3 = inlined_call_operand.hbm [shape: f32[16,128], index: 3, kind: output, shape index: {}]  }
   0x1   :  { %10 = vsyncpa [#allocation3 + $0x1], 0 }
   0x2   :  { %11 = vsyncpa [#allocation6], 0 }
   0x3   :  { %12 = vsyncpa [#allocation4], 0 }
   0x4   :  { %14 = vsyncpa [#allocation4 + $0x1], 0  ;;  %s648_s12 = smov 0   ;;  %s650_s13 = smov 0  }
   0x5   :  { %s652_s14 = smov 0   ;;  %s654_s15 = smov 0  }
   0x6 LB: > { %s669_s16 = sadd.s32 4294967295, %s618_s15   ;;  %s388_s17 = sadd.s32 4294967294, %s618_s15   ;;  %s618_s15 = sphi %s654_s15, %s874_s15   ;;  %s614_s14 = sphi %s652_s14, %s873_s14   ;;  %s610_s13 = sphi %s650_s13, %s872_s13   ;;  %s606_s12 = sphi %s648_s12, %s871_s12  }
   0x7   : > { %p40_p0 = scmp.ne.s32.totalorder %s610_s13, %s606_s12  ;;  %p855_p1 = scmp.eq.s32.totalorder %s669_s16, 0 }
   0x8   : > { %p112_p3 = scmp.eq.s32.totalorder %s388_s17, 1  ;;  %p389_p5 = scmp.ge.s32.totalorder %s618_s15, 1 }
   0x9   : > { %p678_p4 = por %p855_p1, %p40_p0  ;;  %p119_p7 = scmp.lt.s32.totalorder %s618_s15, 3 }
   0xa   : > { %p683_p6 = por %p112_p3, %p40_p0  ;;  %s620_s21 = smov [#allocation5]  }
   0xb   : > { %s858_s18 = scalar_select %p678_p4, 1, 0 }
   0xc   : > { %s859_s19 = scalar_select %p683_p6, 1, 0 }
   0xd   : > { %p688_p8 = pnand %p389_p5, %p119_p7  ;;  %s131_s22 = sshll.u32 %s620_s21, 4  ;;  %s692_s22 = int_to_ptr.vmem [resolvable:$true] %s131_s22 }
   0xe   : > { %s704_s24 = sadd.s32 1, %s618_s15   ;;  %s27_s25 = sadd.s32 1, %s614_s14 }
   0xf   : > { %s860_s20 = scalar_select %p688_p8, 1, 0 }
  0x10   : > { %p434_p9 = pneg %p688_p8  ;;  %s24_s26 = ssub.s32 %s618_s15, %s704_s24 }
  0x11   : > { %s490_s29 = scalar_lea.hbm %s852_s1, 512 }
  0x12   : > { %p699_p11 = pnand %p434_p9, %p855_p1  ;;  %p491_p12 = scmp.ne.s32.totalorder %s852_s1, %s490_s29 }
  0x13   : > { %p497_p5 = scmp.lt.u32.totalorder %s490_s29, %s852_s1 }
  0x14   : > { %p492_p13 = pneg %p699_p11 }
  0x16   : > { %p493_p0 = pnand %p492_p13, %p491_p12 }
  0x18   : > { %p494_p3 = pneg %p493_p0 }
  0x1a   : > { %p499_p7 = pnand %p497_p5, %p494_p3 }
  0x1c   : > { %502 = shalt.err (!%p499_p7)
}
  0x1d   : > { %s503_s7 = scalar_lea.vmem %s692_s22, 512  ;;  %p511_p2 = scmp.lt.s32.totalorder %s692_s22, %s692_s22 }
  0x1e   : > { %p504_p9 = scmp.ne.s32.totalorder %s692_s22, %s503_s7  ;;  %p512_p6 = scmp.lt.s32.totalorder %s503_s7, %s503_s7 }
  0x20   : > { %p506_p10 = pnand %p504_p9, %p492_p13  ;;  %p513_p4 = por %p512_p6, %p511_p2 }
  0x22   : > { %p507_p1 = pneg %p506_p10 }
  0x24   : > { %p514_p8 = pnand %p513_p4, %p507_p1 }
  0x26   : > { %517 = shalt.err (!%p514_p8)
}
  0x27   : > { %s621_s8 = smov 128   ;;  %s622_s9 = smov 8  }
  0x28   : > { %437 = dma.hbm_to_vmem [thread:$0]  (!%p699_p11), %s852_s1, 512, %s692_s22, [#allocation6], %s621_s8, %s621_s8, %s622_s9  }
  0x29   : > { %p25_p2 = scmp.eq.s32.totalorder %s24_s26, 0  ;;  %p34_p1 = scmp.ne.s32.totalorder %s614_s14, %s610_s13 }
  0x2a   : > { %p35_p4 = scmp.eq.s32.totalorder %s618_s15, 0  ;;  %p447_p6 = scmp.lt.s32.totalorder %s618_s15, 2 }
  0x2b   : > { %s735_s17 = scalar_select %p25_p2, %s614_s14, %s27_s25  }
  0x2c   : > { %p36_p8 = por %p35_p4, %p34_p1  ;;  %p862_p10 = scmp.eq.s32.totalorder %s669_s16, 1 }
  0x2d   : > { %s148_s27 = sand.u32 1, %s614_s14   ;;  %s393_s28 = sshll.u32 %s618_s15, 7 }
  0x2e   : > { %p739_p12 = por %p862_p10, %p34_p1  ;;  %s392_s29 = sshll.u32 %s148_s27, 3 }
  0x2f   : > { %s748_s4 = scalar_lea.hbm %s851_s0, %s393_s28  ;;  %s152_s22 = scalar_lea.vmem [#allocation2], %s392_s29 }
  0x30   : > { %s159_s25 = sshll.u32 %s152_s22, 4  ;;  %p750_p11 = pnand %p447_p6, %p36_p8  ;;  %s754_s25 = int_to_ptr.vmem [resolvable:$true] %s159_s25 }
  0x31   : > { %s149_s5 = scalar_lea.sflag [#allocation3], %s148_s27  ;;  %s518_s6 = scalar_lea.hbm %s748_s4, 128 }
  0x32   : > { %p519_p13 = scmp.ne.s32.totalorder %s748_s4, %s518_s6  ;;  %p520_p0 = pneg %p750_p11 }
  0x33   : > { %s523_s9 = scalar_lea.hbm %s851_s0, 256  ;;  %p524_p7 = scmp.lt.u32.totalorder %s748_s4, %s851_s0 }
  0x34   : > { %p521_p3 = pnand %p520_p0, %p519_p13  ;;  %p525_p9 = scmp.lt.u32.totalorder %s523_s9, %s518_s6 }
  0x35   : > { %p527_p1 = scmp.lt.u32.totalorder %s518_s6, %s748_s4 }
  0x36   : > { %p522_p5 = pneg %p521_p3  ;;  %p526_p2 = por %p525_p9, %p524_p7 }
  0x38   : > { %p528_p4 = por %p527_p1, %p526_p2 }
  0x3a   : > { %p529_p6 = pnand %p528_p4, %p522_p5 }
  0x3c   : > { %532 = shalt.err (!%p529_p6)
}
  0x3d   : > { %s533_s27 = scalar_lea.vmem %s754_s25, 128  ;;  %s623_s28 = smov [#allocation2]  }
  0x3e   : > { %p534_p8 = scmp.ne.s32.totalorder %s754_s25, %s533_s27  ;;  %s538_s29 = sshll.u32 %s623_s28, 4  ;;  %s539_s29 = int_to_ptr.vmem [resolvable:$false] %s538_s29 }
  0x3f   : > { %s540_s23 = scalar_lea.vmem %s539_s29, 256  ;;  %p541_p3 = scmp.lt.s32.totalorder %s754_s25, %s539_s29 }
  0x40   : > { %p536_p10 = pnand %p534_p8, %p520_p0  ;;  %p542_p7 = scmp.lt.s32.totalorder %s540_s23, %s533_s27 }
  0x42   : > { %p537_p13 = pneg %p536_p10  ;;  %p543_p9 = por %p542_p7, %p541_p3 }
  0x44   : > { %p544_p2 = pnand %p543_p9, %p537_p13 }
  0x46   : > { %547 = shalt.err (!%p544_p2)
}
  0x47   : > { %441 = dma.hbm_to_vmem [thread:$0]  (!%p750_p11), %s748_s4, 128, %s754_s25, %s149_s5  }
  0x48   : > { %p865_p5 = scmp.ne.s32.totalorder %s860_s20, 0 }
  0x49   : > { %s784_s30 = sand.u32 (!%p865_p5), 1, %s610_s13   ;;  %p866_p0 = scmp.ne.s32.totalorder (!%p865_p5), %s858_s18, 0 }
  0x4a   : > { %168 = sbr.rel (%p865_p5) target bundleno = 482 (0x1e2), region = 32  ;;  %s395_s22 = sshll.u32 (!%p865_p5), %s784_s30, 3 }
  0x4b   : > { %s171_s6 = scalar_lea.sflag (!%p865_p5), [#allocation3], %s784_s30  ;;  %s174_s7 = scalar_lea.vmem (!%p865_p5), [#allocation2], %s395_s22 }
  0x51   : > { %593 = dma.done.wait (%p866_p0), %s171_s6, 128  }
  0x52   : > { %595 = vsyncadd (%p866_p0), %s171_s6, 4294967168  ;;  %p867_p11 = scmp.eq.s32.totalorder %s669_s16, 0 }
  0x54   : > { %597 = dma.done.wait (%p867_p11), [#allocation6], 512   ;;  %p868_p1 = pmov %p867_p11 }
  0x55   : > { %v624_v0 = vmov 0.0|0.0   ;;  %vm625_vm0 = vmmov 0   ;;  %v626_v1 = vmov 0.0   ;;  %v202_v2 = vld [vmem:[#allocation5] sm:$0xff]  ;;  %v203_v3 = vld [vmem:[#allocation5 + $0x8] sm:$0xff]  ;;  %v204_v4 = vld [vmem:[#allocation5 + $0x10] sm:$0xff] }
  0x56   : > { %599 = vsyncadd (%p868_p1), [#allocation6], 4294966784  ;;  %420 = vmatprep.subr.bf16.mxu0 %v624_v0  ;;  %417 = vmatprep.mubr.msk.f32.mxu0 %vm625_vm0, %v626_v1  ;;  %v421_v5 = vpack.c.bf16 %v203_v3, %v202_v2  ;;  %v205_v6 = vld [vmem:[#allocation5 + $0x18] sm:$0xff]  ;;  %vm213_vm1 = vcmask 261120   ;;  %v398_v9 = vld [vmem:[%s853_s2] ss:$0 sm:$0xff] }
  0x57   : > { %v424_v7 = vpack.c.bf16 %v205_v6, %v204_v4  ;;  %v201_v8 = vld [vmem:[%s174_s7] sm:$0xff]  ;;  %s401_s4 = sshll.u32 %s669_s16, 7  ;;  %s200_s25 = scalar_lea.vmem [#allocation7], %s395_s22 }
  0x58   : > { %422 = vmatpush3.bf16.msra.mxu0 %v421_v5  ;;  %s308_s26 = sshll.u32 %s200_s25, 4  ;;  %s807_s9 = scalar_lea.hbm %s854_s3, %s401_s4  ;;  %s809_s26 = int_to_ptr.vmem [resolvable:$true] %s308_s26 }
  0x59   : > { %423 = vmatprep.subr.bf16.mxu0 %v624_v0  ;;  %s295_s10 = scalar_lea.sflag [#allocation4], %s784_s30  ;;  %s548_s11 = scalar_lea.vmem %s809_s26, 128 }
  0x5a   : > { %p549_p4 = scmp.ne.s32.totalorder %s809_s26, %s548_s11  ;;  %s627_s16 = smov [#allocation7]  }
  0x5b   : > { %s552_s27 = sshll.u32 %s627_s16, 4  ;;  %s553_s27 = int_to_ptr.vmem [resolvable:$false] %s552_s27 }
  0x5c   : > { %425 = vmatpush3.bf16.msra.mxu0 %v424_v7  ;;  %p550_p6 = pnand %p549_p4, %p739_p12  ;;  %s554_s28 = scalar_lea.vmem %s553_s27, 256 }
  0x5d   : > { %p555_p10 = scmp.lt.s32.totalorder %s809_s26, %s553_s27  ;;  %p556_p13 = scmp.lt.s32.totalorder %s554_s28, %s548_s11 }
  0x5e   : > { %p551_p8 = pneg %p550_p6 }
  0x5f   : > { %418 = vmatmul.mubr.msk.f32.vlgmr.msra.gmra.mrb[0].mxu0 %vm213_vm1, %v201_v8  ;;  %p557_p3 = por %p556_p13, %p555_p10 }
  0x61   : > { %p558_p7 = pnand %p557_p3, %p551_p8 }
 0x132   : > { %v283_v10 = vpop.f32.mrb[0].mxu0 }
 0x133   : > { %v284_v11 = vadd.f32 %v398_v9, %v283_v10  ;;  %v419_v12 = vpop.f32.mrb[1].mxu0 }
 0x135   : > { %v287_v13 = vmul.f32 %v284_v11, %v284_v11 }
 0x137   : > { %288 = vadd.xlane.f32.xlu0 %v287_v13 }
 0x1c4   : > { %v289_v14 = vpop.xlane.xlu0 %288 }
 0x1c5   : > { %v290_v15 = vmax.f32 %v289_v14, 1e-24 }
 0x1c7   : > { %488 = vrsqrt.f32 %v290_v15 }
 0x1d1   : > { %v489_v16 = vpop.eup %488 }
 0x1d2   : > { %v292_v17 = vmul.f32 %v489_v16, %v284_v11 }
 0x1d4   : > { %293 = vst [vmem:[%s200_s25] sm:$0xff] %v292_v17 }
 0x1d5   : > { %561 = shalt.err (!%p558_p7)
}
 0x1d6   : > { %s562_s29 = scalar_lea.hbm %s807_s9, 128  ;;  %s566_s22 = scalar_lea.hbm %s854_s3, 256 }
 0x1d7   : > { %p563_p9 = scmp.ne.s32.totalorder %s807_s9, %s562_s29  ;;  %p567_p0 = scmp.lt.u32.totalorder %s807_s9, %s854_s3 }
 0x1d8   : > { %p568_p11 = scmp.lt.u32.totalorder %s566_s22, %s562_s29  ;;  %p570_p4 = scmp.lt.u32.totalorder %s562_s29, %s807_s9 }
 0x1d9   : > { %p564_p2 = pnand %p563_p9, %p739_p12 }
 0x1da   : > { %p569_p1 = por %p568_p11, %p567_p0 }
 0x1db   : > { %p565_p5 = pneg %p564_p2 }
 0x1dc   : > { %p571_p6 = por %p570_p4, %p569_p1 }
 0x1de   : > { %p572_p8 = pnand %p571_p6, %p565_p5 }
 0x1e0   : > { %575 = shalt.err (!%p572_p8)
}
 0x1e1   : > { %432 = dma.vmem_to_hbm [thread:$0]  (%p739_p12), %s809_s26, 128, %s807_s9, %s295_s10  }
 0x1e2 PF: > { %s320_s18 = sand.u32 1, %s606_s12   ;;  %p869_p10 = scmp.ne.s32.totalorder %s859_s19, 0 }
 0x1e3   : > { %p870_p13 = scmp.ge.s32.totalorder %s618_s15, 2  ;;  %s321_s20 = scalar_lea.sflag [#allocation4], %s320_s18 }
 0x1e5   : > { %p443_p3 = pnand %p870_p13, %p869_p10 }
 0x1e7   : > { %601 = dma.done.wait (!%p443_p3), %s321_s20, 128  }
 0x1e8   : > { %603 = vsyncadd (!%p443_p3), %s321_s20, 4294967168  ;;  %p17_p7 = scmp.ge.s32.totalorder %s704_s24, 4   ;;  %s871_s12 = smov %s610_s13 }
 0x1e9   : > { %s872_s13 = smov %s614_s14  ;;  %s873_s14 = smov %s735_s17 }
 0x1ea   : > { %s874_s15 = smov %s704_s24  ;;  %19 = sbr.rel (!%p17_p7) target bundleno = 6 (0x6), region = 81 }
 0x1f1   :  { %326 = vsyncpa [#allocation3], 1 }
 0x1f2   :  { %328 = vsyncpa [#allocation3 + $0x1], 1 }
 0x1f3   :  { %329 = vsyncpa [#allocation6], 1 }
 0x1f4   :  { %330 = vsyncpa [#allocation4], 1 }
 0x1f5   :  { %332 = vsyncpa [#allocation4 + $0x1], 1 }

// kernel: tpu_custom_call.1
= control target key start
LH: loop header
LB: loop body
LE: loop exit
PB: predicated region body
PF: predicated region fallthrough
CT: control target
= control target key end

     0   :  { %8 = vsyncpa [#allocation3], 0  ;;  %s851_s0 = inlined_call_operand.hbm [shape: f32[16,32], index: 0, kind: input, shape index: {}]   ;;  %s852_s1 = inlined_call_operand.hbm [shape: f32[32,128], index: 1, kind: input, shape index: {}]   ;;  %s853_s2 = inlined_call_operand.vmem [shape: f32[1,128], index: 2, kind: input, shape index: {}]   ;;  %s854_s3 = inlined_call_operand.hbm [shape: f32[16,128], index: 3, kind: output, shape index: {}]  }
   0x1   :  { %10 = vsyncpa [#allocation3 + $0x1], 0 }
   0x2   :  { %11 = vsyncpa [#allocation6], 0 }
   0x3   :  { %12 = vsyncpa [#allocation4], 0 }
   0x4   :  { %14 = vsyncpa [#allocation4 + $0x1], 0  ;;  %s648_s12 = smov 0   ;;  %s650_s13 = smov 0  }
   0x5   :  { %s652_s14 = smov 0   ;;  %s654_s15 = smov 0  }
   0x6 LB: > { %s669_s16 = sadd.s32 4294967295, %s618_s15   ;;  %s388_s17 = sadd.s32 4294967294, %s618_s15   ;;  %s618_s15 = sphi %s654_s15, %s874_s15   ;;  %s614_s14 = sphi %s652_s14, %s873_s14   ;;  %s610_s13 = sphi %s650_s13, %s872_s13   ;;  %s606_s12 = sphi %s648_s12, %s871_s12  }
   0x7   : > { %p40_p0 = scmp.ne.s32.totalorder %s610_s13, %s606_s12  ;;  %p855_p1 = scmp.eq.s32.totalorder %s669_s16, 0 }
   0x8   : > { %p112_p3 = scmp.eq.s32.totalorder %s388_s17, 1  ;;  %p389_p5 = scmp.ge.s32.totalorder %s618_s15, 1 }
   0x9   : > { %p678_p4 = por %p855_p1, %p40_p0  ;;  %p119_p7 = scmp.lt.s32.totalorder %s618_s15, 3 }
   0xa   : > { %p683_p6 = por %p112_p3, %p40_p0  ;;  %s620_s21 = smov [#allocation5]  }
   0xb   : > { %s858_s18 = scalar_select %p678_p4, 1, 0 }
   0xc   : > { %s859_s19 = scalar_select %p683_p6, 1, 0 }
   0xd   : > { %p688_p8 = pnand %p389_p5, %p119_p7  ;;  %s131_s22 = sshll.u32 %s620_s21, 4  ;;  %s692_s22 = int_to_ptr.vmem [resolvable:$true] %s131_s22 }
   0xe   : > { %s704_s24 = sadd.s32 1, %s618_s15   ;;  %s27_s25 = sadd.s32 1, %s614_s14 }
   0xf   : > { %s860_s20 = scalar_select %p688_p8, 1, 0 }
  0x10   : > { %p434_p9 = pneg %p688_p8  ;;  %s24_s26 = ssub.s32 %s618_s15, %s704_s24 }
  0x11   : > { %s490_s29 = scalar_lea.hbm %s852_s1, 512 }
  0x12   : > { %p699_p11 = pnand %p434_p9, %p855_p1  ;;  %p491_p12 = scmp.ne.s32.totalorder %s852_s1, %s490_s29 }
  0x13   : > { %p497_p5 = scmp.lt.u32.totalorder %s490_s29, %s852_s1 }
  0x14   : > { %p492_p13 = pneg %p699_p11 }
  0x16   : > { %p493_p0 = pnand %p492_p13, %p491_p12 }
  0x18   : > { %p494_p3 = pneg %p493_p0 }
  0x1a   : > { %p499_p7 = pnand %p497_p5, %p494_p3 }
  0x1c   : > { %502 = shalt.err (!%p499_p7)
}
  0x1d   : > { %s503_s7 = scalar_lea.vmem %s692_s22, 512  ;;  %p511_p2 = scmp.lt.s32.totalorder %s692_s22, %s692_s22 }
  0x1e   : > { %p504_p9 = scmp.ne.s32.totalorder %s692_s22, %s503_s7  ;;  %p512_p6 = scmp.lt.s32.totalorder %s503_s7, %s503_s7 }
  0x20   : > { %p506_p10 = pnand %p504_p9, %p492_p13  ;;  %p513_p4 = por %p512_p6, %p511_p2 }
  0x22   : > { %p507_p1 = pneg %p506_p10 }
  0x24   : > { %p514_p8 = pnand %p513_p4, %p507_p1 }
  0x26   : > { %517 = shalt.err (!%p514_p8)
}
  0x27   : > { %s621_s8 = smov 128   ;;  %s622_s9 = smov 8  }
  0x28   : > { %437 = dma.hbm_to_vmem [thread:$0]  (!%p699_p11), %s852_s1, 512, %s692_s22, [#allocation6], %s621_s8, %s621_s8, %s622_s9  }
  0x29   : > { %p25_p2 = scmp.eq.s32.totalorder %s24_s26, 0  ;;  %p34_p1 = scmp.ne.s32.totalorder %s614_s14, %s610_s13 }
  0x2a   : > { %p35_p4 = scmp.eq.s32.totalorder %s618_s15, 0  ;;  %p447_p6 = scmp.lt.s32.totalorder %s618_s15, 2 }
  0x2b   : > { %s735_s17 = scalar_select %p25_p2, %s614_s14, %s27_s25  }
  0x2c   : > { %p36_p8 = por %p35_p4, %p34_p1  ;;  %p862_p10 = scmp.eq.s32.totalorder %s669_s16, 1 }
  0x2d   : > { %s148_s27 = sand.u32 1, %s614_s14   ;;  %s393_s28 = sshll.u32 %s618_s15, 7 }
  0x2e   : > { %p739_p12 = por %p862_p10, %p34_p1  ;;  %s392_s29 = sshll.u32 %s148_s27, 3 }
  0x2f   : > { %s748_s4 = scalar_lea.hbm %s851_s0, %s393_s28  ;;  %s152_s22 = scalar_lea.vmem [#allocation2], %s392_s29 }
  0x30   : > { %s159_s25 = sshll.u32 %s152_s22, 4  ;;  %p750_p11 = pnand %p447_p6, %p36_p8  ;;  %s754_s25 = int_to_ptr.vmem [resolvable:$true] %s159_s25 }
  0x31   : > { %s149_s5 = scalar_lea.sflag [#allocation3], %s148_s27  ;;  %s518_s6 = scalar_lea.hbm %s748_s4, 128 }
  0x32   : > { %p519_p13 = scmp.ne.s32.totalorder %s748_s4, %s518_s6  ;;  %p520_p0 = pneg %p750_p11 }
  0x33   : > { %s523_s9 = scalar_lea.hbm %s851_s0, 256  ;;  %p524_p7 = scmp.lt.u32.totalorder %s748_s4, %s851_s0 }
  0x34   : > { %p521_p3 = pnand %p520_p0, %p519_p13  ;;  %p525_p9 = scmp.lt.u32.totalorder %s523_s9, %s518_s6 }
  0x35   : > { %p527_p1 = scmp.lt.u32.totalorder %s518_s6, %s748_s4 }
  0x36   : > { %p522_p5 = pneg %p521_p3  ;;  %p526_p2 = por %p525_p9, %p524_p7 }
  0x38   : > { %p528_p4 = por %p527_p1, %p526_p2 }
  0x3a   : > { %p529_p6 = pnand %p528_p4, %p522_p5 }
  0x3c   : > { %532 = shalt.err (!%p529_p6)
}
  0x3d   : > { %s533_s27 = scalar_lea.vmem %s754_s25, 128  ;;  %s623_s28 = smov [#allocation2]  }
  0x3e   : > { %p534_p8 = scmp.ne.s32.totalorder %s754_s25, %s533_s27  ;;  %s538_s29 = sshll.u32 %s623_s28, 4  ;;  %s539_s29 = int_to_ptr.vmem [resolvable:$false] %s538_s29 }
  0x3f   : > { %s540_s23 = scalar_lea.vmem %s539_s29, 256  ;;  %p541_p3 = scmp.lt.s32.totalorder %s754_s25, %s539_s29 }
  0x40   : > { %p536_p10 = pnand %p534_p8, %p520_p0  ;;  %p542_p7 = scmp.lt.s32.totalorder %s540_s23, %s533_s27 }
  0x42   : > { %p537_p13 = pneg %p536_p10  ;;  %p543_p9 = por %p542_p7, %p541_p3 }
  0x44   : > { %p544_p2 = pnand %p543_p9, %p537_p13 }
  0x46   : > { %547 = shalt.err (!%p544_p2)
}
  0x47   : > { %441 = dma.hbm_to_vmem [thread:$0]  (!%p750_p11), %s748_s4, 128, %s754_s25, %s149_s5  }
  0x48   : > { %p865_p5 = scmp.ne.s32.totalorder %s860_s20, 0 }
  0x49   : > { %s784_s30 = sand.u32 (!%p865_p5), 1, %s610_s13   ;;  %p866_p0 = scmp.ne.s32.totalorder (!%p865_p5), %s858_s18, 0 }
  0x4a   : > { %168 = sbr.rel (%p865_p5) target bundleno = 482 (0x1e2), region = 32  ;;  %s395_s22 = sshll.u32 (!%p865_p5), %s784_s30, 3 }
  0x4b   : > { %s171_s6 = scalar_lea.sflag (!%p865_p5), [#allocation3], %s784_s30  ;;  %s174_s7 = scalar_lea.vmem (!%p865_p5), [#allocation2], %s395_s22 }
  0x51   : > { %593 = dma.done.wait (%p866_p0), %s171_s6, 128  }
  0x52   : > { %595 = vsyncadd (%p866_p0), %s171_s6, 4294967168  ;;  %p867_p11 = scmp.eq.s32.totalorder %s669_s16, 0 }
  0x54   : > { %597 = dma.done.wait (%p867_p11), [#allocation6], 512   ;;  %p868_p1 = pmov %p867_p11 }
  0x55   : > { %v624_v0 = vmov 0.0|0.0   ;;  %vm625_vm0 = vmmov 0   ;;  %v626_v1 = vmov 0.0   ;;  %v202_v2 = vld [vmem:[#allocation5] sm:$0xff]  ;;  %v203_v3 = vld [vmem:[#allocation5 + $0x8] sm:$0xff]  ;;  %v204_v4 = vld [vmem:[#allocation5 + $0x10] sm:$0xff] }
  0x56   : > { %599 = vsyncadd (%p868_p1), [#allocation6], 4294966784  ;;  %420 = vmatprep.subr.bf16.mxu0 %v624_v0  ;;  %417 = vmatprep.mubr.msk.f32.mxu0 %vm625_vm0, %v626_v1  ;;  %v421_v5 = vpack.c.bf16 %v203_v3, %v202_v2  ;;  %v205_v6 = vld [vmem:[#allocation5 + $0x18] sm:$0xff]  ;;  %vm213_vm1 = vcmask 261120   ;;  %v398_v9 = vld [vmem:[%s853_s2] ss:$0 sm:$0xff] }
  0x57   : > { %v424_v7 = vpack.c.bf16 %v205_v6, %v204_v4  ;;  %v201_v8 = vld [vmem:[%s174_s7] sm:$0xff]  ;;  %s401_s4 = sshll.u32 %s669_s16, 7  ;;  %s200_s25 = scalar_lea.vmem [#allocation7], %s395_s22 }
  0x58   : > { %422 = vmatpush3.bf16.msra.mxu0 %v421_v5  ;;  %s308_s26 = sshll.u32 %s200_s25, 4  ;;  %s807_s9 = scalar_lea.hbm %s854_s3, %s401_s4  ;;  %s809_s26 = int_to_ptr.vmem [resolvable:$true] %s308_s26 }
  0x59   : > { %423 = vmatprep.subr.bf16.mxu0 %v624_v0  ;;  %s295_s10 = scalar_lea.sflag [#allocation4], %s784_s30  ;;  %s548_s11 = scalar_lea.vmem %s809_s26, 128 }
  0x5a   : > { %p549_p4 = scmp.ne.s32.totalorder %s809_s26, %s548_s11  ;;  %s627_s16 = smov [#allocation7]  }
  0x5b   : > { %s552_s27 = sshll.u32 %s627_s16, 4  ;;  %s553_s27 = int_to_ptr.vmem [resolvable:$false] %s552_s27 }
  0x5c   : > { %425 = vmatpush3.bf16.msra.mxu0 %v424_v7  ;;  %p550_p6 = pnand %p549_p4, %p739_p12  ;;  %s554_s28 = scalar_lea.vmem %s553_s27, 256 }
  0x5d   : > { %p555_p10 = scmp.lt.s32.totalorder %s809_s26, %s553_s27  ;;  %p556_p13 = scmp.lt.s32.totalorder %s554_s28, %s548_s11 }
  0x5e   : > { %p551_p8 = pneg %p550_p6 }
  0x5f   : > { %418 = vmatmul.mubr.msk.f32.vlgmr.msra.gmra.mrb[0].mxu0 %vm213_vm1, %v201_v8  ;;  %p557_p3 = por %p556_p13, %p555_p10 }
  0x61   : > { %p558_p7 = pnand %p557_p3, %p551_p8 }
 0x132   : > { %v283_v10 = vpop.f32.mrb[0].mxu0 }
 0x133   : > { %v284_v11 = vadd.f32 %v398_v9, %v283_v10  ;;  %v419_v12 = vpop.f32.mrb[1].mxu0 }
 0x135   : > { %v287_v13 = vmul.f32 %v284_v11, %v284_v11 }
 0x137   : > { %288 = vadd.xlane.f32.xlu0 %v287_v13 }
 0x1c4   : > { %v289_v14 = vpop.xlane.xlu0 %288 }
 0x1c5   : > { %v290_v15 = vmax.f32 %v289_v14, 1e-24 }
 0x1c7   : > { %488 = vrsqrt.f32 %v290_v15 }
 0x1d1   : > { %v489_v16 = vpop.eup %488 }
 0x1d2   : > { %v292_v17 = vmul.f32 %v489_v16, %v284_v11 }
 0x1d4   : > { %293 = vst [vmem:[%s200_s25] sm:$0xff] %v292_v17 }
 0x1d5   : > { %561 = shalt.err (!%p558_p7)
}
 0x1d6   : > { %s562_s29 = scalar_lea.hbm %s807_s9, 128  ;;  %s566_s22 = scalar_lea.hbm %s854_s3, 256 }
 0x1d7   : > { %p563_p9 = scmp.ne.s32.totalorder %s807_s9, %s562_s29  ;;  %p567_p0 = scmp.lt.u32.totalorder %s807_s9, %s854_s3 }
 0x1d8   : > { %p568_p11 = scmp.lt.u32.totalorder %s566_s22, %s562_s29  ;;  %p570_p4 = scmp.lt.u32.totalorder %s562_s29, %s807_s9 }
 0x1d9   : > { %p564_p2 = pnand %p563_p9, %p739_p12 }
 0x1da   : > { %p569_p1 = por %p568_p11, %p567_p0 }
 0x1db   : > { %p565_p5 = pneg %p564_p2 }
 0x1dc   : > { %p571_p6 = por %p570_p4, %p569_p1 }
 0x1de   : > { %p572_p8 = pnand %p571_p6, %p565_p5 }
 0x1e0   : > { %575 = shalt.err (!%p572_p8)
}
 0x1e1   : > { %432 = dma.vmem_to_hbm [thread:$0]  (%p739_p12), %s809_s26, 128, %s807_s9, %s295_s10  }
 0x1e2 PF: > { %s320_s18 = sand.u32 1, %s606_s12   ;;  %p869_p10 = scmp.ne.s32.totalorder %s859_s19, 0 }
 0x1e3   : > { %p870_p13 = scmp.ge.s32.totalorder %s618_s15, 2  ;;  %s321_s20 = scalar_lea.sflag [#allocation4], %s320_s18 }
 0x1e5   : > { %p443_p3 = pnand %p870_p13, %p869_p10 }
 0x1e7   : > { %601 = dma.done.wait (!%p443_p3), %s321_s20, 128  }
 0x1e8   : > { %603 = vsyncadd (!%p443_p3), %s321_s20, 4294967168  ;;  %p17_p7 = scmp.ge.s32.totalorder %s704_s24, 4   ;;  %s871_s12 = smov %s610_s13 }
 0x1e9   : > { %s872_s13 = smov %s614_s14  ;;  %s873_s14 = smov %s735_s17 }
 0x1ea   : > { %s874_s15 = smov %s704_s24  ;;  %19 = sbr.rel (!%p17_p7) target bundleno = 6 (0x6), region = 81 }
 0x1f1   :  { %326 = vsyncpa [#allocation3], 1 }
 0x1f2   :  { %328 = vsyncpa [#allocation3 + $0x1], 1 }
 0x1f3   :  { %329 = vsyncpa [#allocation6], 1 }
 0x1f4   :  { %330 = vsyncpa [#allocation4], 1 }
 0x1f5   :  { %332 = vsyncpa [#allocation4 + $0x1], 1 }

</bundles_post_ra>
